<compile_context>
chip_gen: v7x
topology: tpu7x:2x2x1
jax: 0.10.0
libtpu: 0.0.40
codegen_flags: <defaults>
</compile_context>

<pallas_src>
import jax
import jax.numpy as jnp
from jax.experimental import pallas as pl
from jax.experimental.pallas import tpu as pltpu


def _round_up(x, m):
    return ((x + m - 1) // m) * m


def _largest_divisor_tile(n_pad, cap):
    """Largest multiple of 128 that is <= cap and divides n_pad."""
    best = 128
    for t in range(128, min(cap, n_pad) + 1, 128):
        if n_pad % t == 0:
            best = t
    return best


def _choose_tiles(N, C, tm_max=512, tk_max=2048):
    n_pad = _round_up(N, 128)
    c_pad = _round_up(C, 128)
    tm = _largest_divisor_tile(n_pad, tm_max)
    tk = _largest_divisor_tile(n_pad, tk_max)
    # v7x has 2 TensorCores; keep the "parallel" i axis at >= 2 blocks when we can.
    if n_pad // tm < 2:
        half = tm // 2
        if half >= 128 and half % 128 == 0 and n_pad % half == 0:
            tm = half
    return n_pad, c_pad, tm, tk


def _lp_step_kernel(a_ref, y_ref, res_ref, o_ref, acc_ref):
    """One propagation step for a (tm, c_pad) output tile.

    a_ref   : (tm, tk)     bf16 tile of pre-scaled adjacency A_hat = alpha * S
    y_ref   : (tk, c_pad)  bf16 source rows of the current label matrix
    res_ref : (tm, c_pad)  f32  (1 - alpha) * Y0 rows for this destination tile
    o_ref   : (tm, c_pad)  f32  output rows
    acc_ref : (tm, c_pad)  f32  accumulator scratch, resident across the k axis
    """
    k = pl.program_id(1)
    part = jnp.dot(a_ref[...], y_ref[...], preferred_element_type=jnp.float32)

    @pl.when(k == 0)
    def _():
        acc_ref[...] = res_ref[...] + part          # init with residual folded in

    @pl.when(k > 0)
    def _():
        acc_ref[...] += part

    @pl.when(k == pl.num_programs(1) - 1)
    def _():
        o_ref[...] = acc_ref[...]                   # plain lane-dense store


def _lp_step(a_hat_bf16, y_bf16, residual_f32, *, tm, tk):
    n_pad = a_hat_bf16.shape[0]
    c_pad = y_bf16.shape[1]
    return pl.pallas_call(
        _lp_step_kernel,
        out_shape=jax.ShapeDtypeStruct((n_pad, c_pad), jnp.float32),
        grid_spec=pltpu.PrefetchScalarGridSpec(
            num_scalar_prefetch=0,
            grid=(n_pad // tm, n_pad // tk),
            in_specs=[
                pl.BlockSpec((tm, tk), lambda i, k: (i, k)),       # A_hat tile
                pl.BlockSpec((tk, c_pad), lambda i, k: (k, 0)),    # Y source rows
                pl.BlockSpec((tm, c_pad), lambda i, k: (i, 0)),    # residual rows
            ],
            out_specs=pl.BlockSpec((tm, c_pad), lambda i, k: (i, 0)),
            scratch_shapes=[pltpu.VMEM((tm, c_pad), jnp.float32)],
        ),
        compiler_params=pltpu.CompilerParams(
            dimension_semantics=("parallel", "arbitrary"),
            vmem_limit_bytes=48 * 1024 * 1024,
        ),
    )(a_hat_bf16, y_bf16, residual_f32)


def label_propagation(adj, labels, mask=None, *, num_layers=3, alpha=0.9,
                      norm="both", post_step=None, tm_max=512, tk_max=2048):
    """JAX/Pallas equivalent of LabelPropagation.forward.

    adj    : (N, N) float32 dense adjacency, A[dst, src] = 1 for edge src->dst
             (undirected graph => symmetric). DGL copy_u/sum == h = A @ y.
    labels : (N, C) float32 one-hot labels.
    mask   : optional (N,) bool — only masked rows keep their labels.
    """
    N, C = labels.shape
    labels = labels.astype(jnp.float32)
    adj = adj.astype(jnp.float32)

    y0 = jnp.where(mask[:, None], labels, 0.0) if mask is not None else labels

    # Fold normalization + alpha into the adjacency once (A_hat = alpha * S).
    degs = jnp.maximum(adj.sum(axis=1), 1.0)                     # in-degrees >= 1
    exponent = -0.5 if norm == "both" else -1.0
    nv = jnp.power(degs, exponent).astype(jnp.float32)           # (N,)
    a_hat = adj
    if norm in ("both", "right"):     # source-side scaling:  A D^{-q}
        a_hat = a_hat * nv[None, :]
    if norm in ("both", "left"):      # destination-side scaling:  D^{-p} A
        a_hat = a_hat * nv[:, None]
    a_hat = alpha * a_hat

    # Pad only to 128-alignment; tiles are chosen as divisors of n_pad.
    n_pad, c_pad, tm, tk = _choose_tiles(N, C, tm_max, tk_max)
    a_hat = jnp.pad(a_hat, ((0, n_pad - N), (0, n_pad - N))).astype(jnp.bfloat16)
    y = jnp.pad(y0, ((0, n_pad - N), (0, c_pad - C)))            # f32, padded
    residual = ((1.0 - alpha) * y).astype(jnp.float32)

    # TODO(synk): for realistic sparse graphs, precompute per-i-tile lists of
    # nonzero k-tiles and use scalar prefetch (num_scalar_prefetch>=1) to skip
    # all-zero A_hat tiles; dense streaming is used here.
    for _ in range(num_layers):
        y = _lp_step(a_hat, y.astype(jnp.bfloat16), residual, tm=tm, tk=tk)
        if post_step is not None:
            # post_step has an (N, C) -> (N, C) contract, so slice/re-pad here.
            y = jnp.pad(post_step(y[:N, :C]).astype(jnp.float32),
                        ((0, n_pad - N), (0, c_pad - C)))
    return y[:N, :C]


def _reference(adj, labels, mask, num_layers, alpha, norm):
    """Pure-JAX f32 reference mirroring the PyTorch/DGL semantics."""
    labels = labels.astype(jnp.float32)
    y = jnp.where(mask[:, None], labels, 0.0) if mask is not None else labels
    residual = (1.0 - alpha) * y
    degs = jnp.maximum(adj.sum(axis=1), 1.0)
    nv = jnp.power(degs, -0.5 if norm == "both" else -1.0)[:, None]
    for _ in range(num_layers):
        if norm in ("both", "right"):
            y = y * nv
        y = alpha * (adj @ y)
        if norm in ("both", "left"):
            y = y * nv
        y = y + residual
    return y


if __name__ == "__main__":
    key = jax.random.PRNGKey(0)
    N, C = 128, 16          # nodes, classes
    num_layers, alpha, norm_mode = 3, 0.9, "both"

    k_adj, k_lab, k_mask = jax.random.split(key, 3)

    # Deterministic random undirected graph (symmetric 0/1 adjacency, no self loops).
    upper = (jax.random.uniform(k_adj, (N, N)) < 0.05).astype(jnp.float32)
    upper = jnp.triu(upper, k=1)
    adj = upper + upper.T

    # One-hot labels and a label mask.
    classes = jax.random.randint(k_lab, (N,), 0, C)
    labels = jax.nn.one_hot(classes, C, dtype=jnp.float32)
    mask = jax.random.uniform(k_mask, (N,)) < 0.5

    out = label_propagation(adj, labels, mask, num_layers=num_layers,
                            alpha=alpha, norm=norm_mode)
    out = jax.block_until_ready(out)

    ref = _reference(adj, labels, mask, num_layers, alpha, norm_mode)
    assert out.shape == (N, C)
    # bf16 streaming of A_hat / Y (f32 accumulation) => loosened tolerance.
    max_err = float(jnp.max(jnp.abs(out - ref)))
    assert max_err < 2e-2, f"mismatch vs reference, max_err={max_err}"

    print("KERNEL_OK")
</pallas_src>

<mosaic_0001>
module attributes {stable_mosaic.version = 11 : i64} {
  func.func @_lp_step_kernel(%arg0: i32, %arg1: i32, %arg2: memref<128x128xbf16, #tpu.memory_space<vmem>>, %arg3: memref<128x128xbf16, #tpu.memory_space<vmem>>, %arg4: memref<128x128xf32, #tpu.memory_space<vmem>>, %arg5: memref<128x128xf32, #tpu.memory_space<vmem>>, %arg6: memref<128x128xf32, #tpu.memory_space<vmem>>) attributes {dimension_semantics = [#tpu.dimension_semantics<parallel>, #tpu.dimension_semantics<arbitrary>], iteration_bounds = array<i64: 1, 1>, scalar_prefetch = 0 : i64, scratch_operands = 1 : i64, tpu.core_type = #tpu.core_type<tc>, window_params = [{transform_indices = @transform_0, window_bounds = array<i64: 128, 128>}, {transform_indices = @transform_1, window_bounds = array<i64: 128, 128>}, {transform_indices = @transform_2, window_bounds = array<i64: 128, 128>}, {transform_indices = @transform_3, window_bounds = array<i64: 128, 128>}]} {
    %c0 = arith.constant 0 : index
    %c0_0 = arith.constant 0 : index
    %0 = vector.load %arg2[%c0, %c0_0] : memref<128x128xbf16, #tpu.memory_space<vmem>>, vector<128x128xbf16>
    %c0_1 = arith.constant 0 : index
    %c0_2 = arith.constant 0 : index
    %1 = vector.load %arg3[%c0_1, %c0_2] : memref<128x128xbf16, #tpu.memory_space<vmem>>, vector<128x128xbf16>
    %cst = arith.constant dense<0.000000e+00> : vector<128x128xf32>
    %2 = tpu.matmul %0, %1, %cst {dimension_numbers = #tpu.dot_dimension_numbers<[1], [0], [0], [1], [0, 0, 1, 1], [], []>} : vector<128x128xbf16>, vector<128x128xbf16>, vector<128x128xf32> -> vector<128x128xf32>
    %c0_i32 = arith.constant 0 : i32
    %3 = arith.cmpi eq, %arg1, %c0_i32 : i32
    %4 = arith.extui %3 : i1 to i32
    %c0_i32_3 = arith.constant 0 : i32
    %5 = arith.cmpi ne, %4, %c0_i32_3 : i32
    scf.if %5 {
      %c0_8 = arith.constant 0 : index
      %c0_9 = arith.constant 0 : index
      %12 = vector.load %arg4[%c0_8, %c0_9] : memref<128x128xf32, #tpu.memory_space<vmem>>, vector<128x128xf32>
      %13 = arith.addf %12, %2 : vector<128x128xf32>
      %c0_10 = arith.constant 0 : index
      %c0_11 = arith.constant 0 : index
      %14 = vector.load %arg6[%c0_10, %c0_11] : memref<128x128xf32, #tpu.memory_space<vmem>>, vector<128x128xf32>
      tpu.vector_store %arg6[%c0_10, %c0_11], %13 {strides = array<i32>} : memref<128x128xf32, #tpu.memory_space<vmem>>, vector<128x128xf32>,
    } else {
    }
    %c0_i32_4 = arith.constant 0 : i32
    %6 = arith.cmpi sgt, %arg1, %c0_i32_4 : i32
    %7 = arith.extui %6 : i1 to i32
    %c0_i32_5 = arith.constant 0 : i32
    %8 = arith.cmpi ne, %7, %c0_i32_5 : i32
    scf.if %8 {
      %c0_8 = arith.constant 0 : index
      %c0_9 = arith.constant 0 : index
      %12 = vector.load %arg6[%c0_8, %c0_9] : memref<128x128xf32, #tpu.memory_space<vmem>>, vector<128x128xf32>
      %13 = arith.addf %12, %2 : vector<128x128xf32>
      %c0_10 = arith.constant 0 : index
      %c0_11 = arith.constant 0 : index
      %14 = vector.load %arg6[%c0_10, %c0_11] : memref<128x128xf32, #tpu.memory_space<vmem>>, vector<128x128xf32>
      tpu.vector_store %arg6[%c0_10, %c0_11], %13 {strides = array<i32>} : memref<128x128xf32, #tpu.memory_space<vmem>>, vector<128x128xf32>,
    } else {
    }
    %c0_i32_6 = arith.constant 0 : i32
    %9 = arith.cmpi eq, %arg1, %c0_i32_6 : i32
    %10 = arith.extui %9 : i1 to i32
    %c0_i32_7 = arith.constant 0 : i32
    %11 = arith.cmpi ne, %10, %c0_i32_7 : i32
    scf.if %11 {
      %c0_8 = arith.constant 0 : index
      %c0_9 = arith.constant 0 : index
      %12 = vector.load %arg6[%c0_8, %c0_9] : memref<128x128xf32, #tpu.memory_space<vmem>>, vector<128x128xf32>
      %c0_10 = arith.constant 0 : index
      %c0_11 = arith.constant 0 : index
      %13 = vector.load %arg5[%c0_10, %c0_11] : memref<128x128xf32, #tpu.memory_space<vmem>>, vector<128x128xf32>
      tpu.vector_store %arg5[%c0_10, %c0_11], %12 {strides = array<i32>} : memref<128x128xf32, #tpu.memory_space<vmem>>, vector<128x128xf32>,
    } else {
    }
    return
  }
  func.func @transform_0(%arg0: i32, %arg1: i32) -> (i32, i32) {
    %c0_i32 = arith.constant 0 : i32
    return %arg0, %arg1 : i32, i32
  }
  func.func @transform_1(%arg0: i32, %arg1: i32) -> (i32, i32) {
    %c0_i32 = arith.constant 0 : i32
    %c0_i32_0 = arith.constant 0 : i32
    return %arg1, %c0_i32 : i32, i32
  }
  func.func @transform_2(%arg0: i32, %arg1: i32) -> (i32, i32) {
    %c0_i32 = arith.constant 0 : i32
    %c0_i32_0 = arith.constant 0 : i32
    return %arg0, %c0_i32 : i32, i32
  }
  func.func @transform_3(%arg0: i32, %arg1: i32) -> (i32, i32) {
    %c0_i32 = arith.constant 0 : i32
    %c0_i32_0 = arith.constant 0 : i32
    return %arg0, %c0_i32 : i32, i32
  }
}

</mosaic_0001>

<bundles_post_ra>
// kernel: tpu_custom_call.1
= control target key start
LH: loop header
LB: loop body
LE: loop exit
PB: predicated region body
PF: predicated region fallthrough
CT: control target
= control target key end

     0   :  { %8 = vsyncpa [#allocation4], 0  ;;  %s726_s0 = inlined_call_operand.hbm [shape: bf16[128,128], index: 0, kind: input, shape index: {}]   ;;  %s727_s1 = inlined_call_operand.hbm [shape: bf16[128,128], index: 1, kind: input, shape index: {}]   ;;  %s728_s2 = inlined_call_operand.hbm [shape: f32[128,128], index: 2, kind: input, shape index: {}]   ;;  %s729_s3 = inlined_call_operand.hbm [shape: f32[128,128], index: 3, kind: output, shape index: {}]  }
   0x1   :  { %9 = vsyncpa [#allocation7], 0 }
   0x2   :  { %10 = vsyncpa [#allocation5], 0  ;;  %s637_s12 = smov [#allocation6]   ;;  %s638_s14 = smov [#allocation3]  }
   0x3   :  { %s28_s13 = sshll.u32 %s637_s12, 4  ;;  %s16_s15 = sshll.u32 %s638_s14, 4  ;;  %s29_s13 = int_to_ptr.vmem [resolvable:$true] %s28_s13  ;;  %s665_s15 = int_to_ptr.vmem [resolvable:$true] %s16_s15 }
   0x4   :  { %s543_s18 = scalar_lea.hbm %s727_s1, 1024 }
   0x5   :  { %p544_p0 = scmp.ne.s32.totalorder %s727_s1, %s543_s18  ;;  %p547_p1 = scmp.lt.u32.totalorder %s543_s18, %s727_s1 }
   0x7   :  { %p549_p2 = pnand %p547_p1, %p544_p0 }
   0x9   :  { %552 = shalt.err (!%p549_p2)
}
   0xa   :  { %s553_s23 = scalar_lea.vmem %s29_s13, 1024  ;;  %p558_p4 = scmp.lt.s32.totalorder %s29_s13, %s29_s13 }
   0xb   :  { %p554_p3 = scmp.ne.s32.totalorder %s29_s13, %s553_s23  ;;  %p559_p5 = scmp.lt.s32.totalorder %s553_s23, %s553_s23 }
   0xd   :  { %p560_p6 = por %p559_p5, %p558_p4 }
   0xf   :  { %p561_p7 = pnand %p560_p6, %p554_p3 }
  0x11   :  { %564 = shalt.err (!%p561_p7)
}
  0x12   :  { %s639_s24 = smov 64   ;;  %s640_s25 = smov 4  }
  0x13   :  { %34 = dma.hbm_to_vmem [thread:$0]  %s727_s1, 1024, %s29_s13, [#allocation7], %s639_s24, %s639_s24, %s640_s25  }
  0x14   :  { %s565_s30 = scalar_lea.hbm %s726_s0, 1024 }
  0x15   :  { %p566_p8 = scmp.ne.s32.totalorder %s726_s0, %s565_s30  ;;  %p569_p9 = scmp.lt.u32.totalorder %s565_s30, %s726_s0 }
  0x17   :  { %p571_p10 = pnand %p569_p9, %p566_p8 }
  0x19   :  { %574 = shalt.err (!%p571_p10)
}
  0x1a   :  { %s575_s8 = scalar_lea.vmem %s665_s15, 1024  ;;  %p580_p12 = scmp.lt.s32.totalorder %s665_s15, %s665_s15 }
  0x1b   :  { %p576_p11 = scmp.ne.s32.totalorder %s665_s15, %s575_s8  ;;  %p581_p13 = scmp.lt.s32.totalorder %s575_s8, %s575_s8 }
  0x1d   :  { %p582_p0 = por %p581_p13, %p580_p12 }
  0x1f   :  { %p583_p1 = pnand %p582_p0, %p576_p11 }
  0x21   :  { %586 = shalt.err (!%p583_p1)
}
  0x22   :  { %22 = dma.hbm_to_vmem [thread:$0]  %s726_s0, 1024, %s665_s15, [#allocation4], %s639_s24, %s639_s24, %s640_s25  }
  0x23   :  { %s641_s10 = smov [#allocation8]   ;;  %s587_s14 = scalar_lea.hbm %s728_s2, 2048 }
  0x24   :  { %s40_s11 = sshll.u32 %s641_s10, 4  ;;  %p588_p2 = scmp.ne.s32.totalorder %s728_s2, %s587_s14  ;;  %s41_s11 = int_to_ptr.vmem [resolvable:$true] %s40_s11 }
  0x25   :  { %p591_p3 = scmp.lt.u32.totalorder %s587_s14, %s728_s2 }
  0x27   :  { %p593_p4 = pnand %p591_p3, %p588_p2 }
  0x29   :  { %596 = shalt.err (!%p593_p4)
}
  0x2a   :  { %s597_s20 = scalar_lea.vmem %s41_s11, 2048  ;;  %p602_p6 = scmp.lt.s32.totalorder %s41_s11, %s41_s11 }
  0x2b   :  { %p598_p5 = scmp.ne.s32.totalorder %s41_s11, %s597_s20  ;;  %p603_p7 = scmp.lt.s32.totalorder %s597_s20, %s597_s20 }
  0x2d   :  { %p604_p8 = por %p603_p7, %p602_p6 }
  0x2f   :  { %p605_p9 = pnand %p604_p8, %p598_p5 }
  0x31   :  { %608 = shalt.err (!%p605_p9)
}
  0x32   :  { %s642_s0 = smov 128   ;;  %s643_s15 = smov 8  }
  0x33   :  { %46 = dma.hbm_to_vmem [thread:$0]  %s728_s2, 2048, %s41_s11, [#allocation7], %s642_s0, %s642_s0, %s643_s15  }
  0x34   :  { %631 = dma.done.wait [#allocation4], 1024  }
  0x35   :  { %632 = vsyncadd [#allocation4], 4294966272 }
  0x36   :  { %633 = dma.done.wait [#allocation7], 3072  }
  0x37   :  { %634 = vsyncadd [#allocation7], 4294964224  ;;  %v527_v0 = vld [vmem:[#allocation6] sm:$0xff]   ;;  %v528_v1 = vld [vmem:[#allocation6 + $0x8] sm:$0xff]   ;;  %s644_s2 = smov [#allocation9]  }
  0x38   :  { %471 = vmatprep.subr.bf16.mxu0 %v527_v0  ;;  %503 = vmatprep.subr.bf16.mxu1 %v527_v0  ;;  %v529_v2 = vld [vmem:[#allocation6 + $0x10] sm:$0xff]   ;;  %v530_v3 = vld [vmem:[#allocation6 + $0x18] sm:$0xff]   ;;  %v535_v4 = vld [vmem:[#allocation3] sm:$0xff]   ;;  %s426_s23 = sshll.u32 %s644_s2, 4  ;;  %s427_s23 = int_to_ptr.vmem [resolvable:$true] %s426_s23 }
  0x39   :  { %472 = vmatpush3.bf16.msra.mxu0 %v527_v0  ;;  %511 = vmatpush3.bf16.msra.mxu1 %v527_v0  ;;  %v536_v5 = vld [vmem:[#allocation3 + $0x20] sm:$0xff]   ;;  %v532_v7 = vld [vmem:[#allocation6 + $0x28] sm:$0xff]   ;;  %v533_v8 = vld [vmem:[#allocation6 + $0x30] sm:$0xff]   ;;  %s609_s24 = scalar_lea.vmem %s427_s23, 2048  ;;  %p614_p11 = scmp.lt.s32.totalorder %s427_s23, %s427_s23 }
  0x3a   :  { %473 = vmatprep.subr.bf16.mxu0 %v528_v1  ;;  %504 = vmatprep.subr.bf16.mxu1 %v528_v1  ;;  %v531_v6 = vld [vmem:[#allocation6 + $0x20] sm:$0xff]   ;;  %v534_v9 = vld [vmem:[#allocation6 + $0x38] sm:$0xff]   ;;  %v537_v10 = vld [vmem:[#allocation3 + $0x8] sm:$0xff]   ;;  %p610_p10 = scmp.ne.s32.totalorder %s427_s23, %s609_s24  ;;  %p615_p12 = scmp.lt.s32.totalorder %s609_s24, %s609_s24 }
  0x3b   :  { %487 = vmatprep.mubr.bf16.mxu0 %v535_v4  ;;  %495 = vmatprep.mubr.bf16.mxu1 %v536_v5  ;;  %v538_v11 = vld [vmem:[#allocation3 + $0x28] sm:$0xff]   ;;  %v539_v12 = vld [vmem:[#allocation3 + $0x10] sm:$0xff]   ;;  %v541_v14 = vld [vmem:[#allocation3 + $0x18] sm:$0xff]  }
  0x3c   :  { %v540_v13 = vld [vmem:[#allocation3 + $0x30] sm:$0xff]   ;;  %v542_v15 = vld [vmem:[#allocation3 + $0x38] sm:$0xff]   ;;  %v286_v18 = vld [vmem:[#allocation8] sm:$0xff]  ;;  %p616_p13 = por %p615_p12, %p614_p11 }
  0x3d   :  { %474 = vmatpush3.bf16.msra.mxu0 %v528_v1  ;;  %512 = vmatpush3.bf16.msra.mxu1 %v528_v1  ;;  %v288_v16 = vld [vmem:[#allocation8 + $0x10] sm:$0xff]  ;;  %v294_v19 = vld [vmem:[#allocation8 + $0x40] sm:$0xff]  ;;  %v289_v22 = vld [vmem:[#allocation8 + $0x18] sm:$0xff] }
  0x3e   :  { %475 = vmatprep.subr.bf16.mxu0 %v529_v2  ;;  %505 = vmatprep.subr.bf16.mxu1 %v529_v2  ;;  %v296_v17 = vld [vmem:[#allocation8 + $0x50] sm:$0xff]  ;;  %v297_v23 = vld [vmem:[#allocation8 + $0x58] sm:$0xff]  ;;  %v287_v28 = vld [vmem:[#allocation8 + $0x8] sm:$0xff]  ;;  %p617_p0 = pnand %p616_p13, %p610_p10 }
  0x3f   :  { %v295_v29 = vld [vmem:[#allocation8 + $0x48] sm:$0xff]  ;;  %v292_v40 = vld [vmem:[#allocation8 + $0x30] sm:$0xff]  ;;  %v290_v42 = vld [vmem:[#allocation8 + $0x20] sm:$0xff] }
  0x40   :  { %v300_v41 = vld [vmem:[#allocation8 + $0x70] sm:$0xff]  ;;  %v298_v43 = vld [vmem:[#allocation8 + $0x60] sm:$0xff]  ;;  %v293_v46 = vld [vmem:[#allocation8 + $0x38] sm:$0xff] }
  0x41   :  { %476 = vmatpush3.bf16.msra.mxu0 %v529_v2  ;;  %513 = vmatpush3.bf16.msra.mxu1 %v529_v2  ;;  %v301_v47 = vld [vmem:[#allocation8 + $0x78] sm:$0xff]  ;;  %v291_v52 = vld [vmem:[#allocation8 + $0x28] sm:$0xff] }
  0x42   :  { %477 = vmatprep.subr.bf16.mxu0 %v530_v3  ;;  %506 = vmatprep.subr.bf16.mxu1 %v530_v3  ;;  %v299_v53 = vld [vmem:[#allocation8 + $0x68] sm:$0xff] }
  0x45   :  { %478 = vmatpush3.bf16.msra.mxu0 %v530_v3  ;;  %514 = vmatpush3.bf16.msra.mxu1 %v530_v3 }
  0x46   :  { %479 = vmatprep.subr.bf16.mxu0 %v531_v6  ;;  %507 = vmatprep.subr.bf16.mxu1 %v531_v6 }
  0x49   :  { %480 = vmatpush3.bf16.msra.mxu0 %v531_v6  ;;  %515 = vmatpush3.bf16.msra.mxu1 %v531_v6 }
  0x4a   :  { %481 = vmatprep.subr.bf16.mxu0 %v532_v7  ;;  %508 = vmatprep.subr.bf16.mxu1 %v532_v7 }
  0x4d   :  { %482 = vmatpush3.bf16.msra.mxu0 %v532_v7  ;;  %516 = vmatpush3.bf16.msra.mxu1 %v532_v7 }
  0x4e   :  { %483 = vmatprep.subr.bf16.mxu0 %v533_v8  ;;  %509 = vmatprep.subr.bf16.mxu1 %v533_v8 }
  0x51   :  { %484 = vmatpush3.bf16.msra.mxu0 %v533_v8  ;;  %517 = vmatpush3.bf16.msra.mxu1 %v533_v8 }
  0x52   :  { %485 = vmatprep.subr.bf16.mxu0 %v534_v9  ;;  %510 = vmatprep.subr.bf16.mxu1 %v534_v9 }
  0x55   :  { %486 = vmatpush3.bf16.msra.mxu0 %v534_v9  ;;  %518 = vmatpush3.bf16.msra.mxu1 %v534_v9 }
  0x58   :  { %488 = vmatmul.mubr.bf16.vlgmr.msra.gmra.mrb[0].mxu0 %v537_v10  ;;  %496 = vmatmul.mubr.bf16.vlgmr.msra.gmra.mrb[0].mxu1 %v538_v11 }
  0x59   :  { %491 = vmatprep.mubr.bf16.mxu0 %v539_v12  ;;  %499 = vmatprep.mubr.bf16.mxu1 %v540_v13 }
  0x60   :  { %492 = vmatmul.mubr.bf16.gmra.mrb[4].mxu0 %v541_v14  ;;  %500 = vmatmul.mubr.bf16.gmra.mrb[4].mxu1 %v542_v15 }
 0x12b   :  { %v489_v20 = vpop.f32.mrb[0].mxu0  ;;  %v497_v21 = vpop.f32.mrb[0].mxu1 }
 0x12c   :  { %v304_v24 = vadd.f32 %v489_v20, %v288_v16  ;;  %v312_v25 = vadd.f32 %v497_v21, %v296_v17  ;;  %v219_v26 = vpop.f32.mrb[1].mxu0  ;;  %v251_v27 = vpop.f32.mrb[1].mxu1 }
 0x12d   :  { %v302_v30 = vadd.f32 %v286_v18, %v219_v26  ;;  %v310_v31 = vadd.f32 %v294_v19, %v251_v27  ;;  %v490_v32 = vpop.f32.mrb[2].mxu0  ;;  %v498_v33 = vpop.f32.mrb[2].mxu1 }
 0x12e   :  { %407 = vst [vmem:[#allocation9 + $0x10] sm:$0xff] %v304_v24  ;;  %415 = vst [vmem:[#allocation9 + $0x50] sm:$0xff] %v312_v25  ;;  %v305_v34 = vadd.f32 %v490_v32, %v289_v22  ;;  %v313_v35 = vadd.f32 %v498_v33, %v297_v23  ;;  %v222_v36 = vpop.f32.mrb[3].mxu0  ;;  %v254_v37 = vpop.f32.mrb[3].mxu1 }
 0x12f   :  { %405 = vst [vmem:[#allocation9] sm:$0xff] %v302_v30  ;;  %413 = vst [vmem:[#allocation9 + $0x40] sm:$0xff] %v310_v31  ;;  %v303_v38 = vadd.f32 %v287_v28, %v222_v36  ;;  %v311_v39 = vadd.f32 %v295_v29, %v254_v37 }
 0x130   :  { %408 = vst [vmem:[#allocation9 + $0x18] sm:$0xff] %v305_v34  ;;  %416 = vst [vmem:[#allocation9 + $0x58] sm:$0xff] %v313_v35 }
 0x131   :  { %406 = vst [vmem:[#allocation9 + $0x8] sm:$0xff] %v303_v38  ;;  %414 = vst [vmem:[#allocation9 + $0x48] sm:$0xff] %v311_v39 }
 0x133   :  { %v493_v44 = vpop.f32.mrb[4].mxu0  ;;  %v501_v45 = vpop.f32.mrb[4].mxu1 }
 0x134   :  { %v308_v48 = vadd.f32 %v493_v44, %v292_v40  ;;  %v316_v49 = vadd.f32 %v501_v45, %v300_v41  ;;  %v235_v50 = vpop.f32.mrb[5].mxu0  ;;  %v267_v51 = vpop.f32.mrb[5].mxu1 }
 0x135   :  { %v306_v54 = vadd.f32 %v290_v42, %v235_v50  ;;  %v314_v55 = vadd.f32 %v298_v43, %v267_v51  ;;  %v494_v56 = vpop.f32.mrb[6].mxu0  ;;  %v502_v57 = vpop.f32.mrb[6].mxu1 }
 0x136   :  { %411 = vst [vmem:[#allocation9 + $0x30] sm:$0xff] %v308_v48  ;;  %419 = vst [vmem:[#allocation9 + $0x70] sm:$0xff] %v316_v49  ;;  %v309_v58 = vadd.f32 %v494_v56, %v293_v46  ;;  %v317_v59 = vadd.f32 %v502_v57, %v301_v47  ;;  %v238_v60 = vpop.f32.mrb[7].mxu0  ;;  %v270_v61 = vpop.f32.mrb[7].mxu1 }
 0x137   :  { %409 = vst [vmem:[#allocation9 + $0x20] sm:$0xff] %v306_v54  ;;  %417 = vst [vmem:[#allocation9 + $0x60] sm:$0xff] %v314_v55  ;;  %v307_v62 = vadd.f32 %v291_v52, %v238_v60  ;;  %v315_v63 = vadd.f32 %v299_v53, %v270_v61 }
 0x138   :  { %412 = vst [vmem:[#allocation9 + $0x38] sm:$0xff] %v309_v58  ;;  %420 = vst [vmem:[#allocation9 + $0x78] sm:$0xff] %v317_v59 }
 0x139   :  { %410 = vst [vmem:[#allocation9 + $0x28] sm:$0xff] %v307_v62  ;;  %418 = vst [vmem:[#allocation9 + $0x68] sm:$0xff] %v315_v63 }
 0x13a   :  { %620 = shalt.err (!%p617_p0)
}
 0x13b   :  { %s621_s27 = scalar_lea.hbm %s729_s3, 2048 }
 0x13c   :  { %p622_p1 = scmp.ne.s32.totalorder %s729_s3, %s621_s27  ;;  %p625_p2 = scmp.lt.u32.totalorder %s621_s27, %s729_s3 }
 0x13e   :  { %p627_p3 = pnand %p625_p2, %p622_p1 }
 0x140   :  { %630 = shalt.err (!%p627_p3)
}
 0x141   :  { %432 = dma.vmem_to_hbm [thread:$0]  %s427_s23, 2048, %s729_s3, [#allocation5], %s642_s0, %s642_s0, %s643_s15  }
 0x142   :  { %635 = dma.done.wait [#allocation5], 2048  }
 0x143   :  { %636 = vsyncadd [#allocation5], 4294965248 }
 0x144   :  { %436 = vsyncpa [#allocation4], 1 }
 0x145   :  { %437 = vsyncpa [#allocation7], 1 }
 0x146   :  { %438 = vsyncpa [#allocation5], 1 }

</bundles_post_ra>
